<compile_context>
chip_gen: v6e
topology: v6e:2x2x1
jax: 0.10.0
libtpu: 0.0.40
codegen_flags: <defaults>
</compile_context>

<pallas_src>
import jax
import jax.numpy as jnp
from jax.experimental import pallas as pl
from jax.experimental.pallas import tpu as pltpu

BN_EPS = 1e-5
LANES = 128
SUBLANES = 8


def _pad_rows(n):
    return ((n + SUBLANES - 1) // SUBLANES) * SUBLANES


def _bn_relu(h, gamma, beta):
    """Fused BatchNorm1d (training stats, biased var, two-pass) + ReLU."""
    mu = jnp.mean(h, axis=0, keepdims=True)
    d = h - mu
    var = jnp.mean(d * d, axis=0, keepdims=True)
    scale = gamma * jax.lax.rsqrt(var + BN_EPS)   # rsqrt -> EUP (free slot)
    shift = beta - mu * scale
    return jnp.maximum(h * scale + shift, 0.0)    # one FMA + max per element


def make_encoder_kernel(layout):
    """Kernel with a single packed-parameter slab.

    Ref order (conditional=True):  x, c, slab, out
    Ref order (conditional=False): x, slab, out
    All band offsets in `layout` are Python ints -> static slices (free).
    """
    dx = layout["dx"]
    dc = layout["dc"]
    conditional = layout["conditional"]

    def kernel(*refs):
        if conditional:
            x_ref, c_ref, p_ref, out_ref = refs
        else:
            x_ref, p_ref, out_ref = refs
            c_ref = None

        # ---- first hidden layer: split dot replaces the concat (exact) ----
        l0 = layout["layers"][0]
        wx_start, wc_start = l0["w_start"]
        w1x = p_ref[wx_start:wx_start + dx, :]
        h = jnp.dot(x_ref[...], w1x, preferred_element_type=jnp.float32)
        if conditional:
            w1c = p_ref[wc_start:wc_start + dc, :]
            h = h + jnp.dot(c_ref[...], w1c, preferred_element_type=jnp.float32)
        gb = p_ref[l0["gb_start"]:l0["gb_start"] + 2, :]
        h = _bn_relu(h, gb[0:1, :], gb[1:2, :])

        # ---- remaining hidden layers (K padded to 128, exact: pad rows are 0)
        for lyr in layout["layers"][1:]:
            ws = lyr["w_start"]
            w = p_ref[ws:ws + LANES, :]
            h = jnp.dot(h, w, preferred_element_type=jnp.float32)
            gb = p_ref[lyr["gb_start"]:lyr["gb_start"] + 2, :]
            h = _bn_relu(h, gb[0:1, :], gb[1:2, :])

        # ---- fused mean/log_var heads, lane-dense (batch, 128) output ----
        hw_start = layout["head_w_start"]
        hb_start = layout["head_b_start"]
        w_heads = p_ref[hw_start:hw_start + LANES, :]
        b_heads = p_ref[hb_start:hb_start + 1, :]
        out_ref[...] = (jnp.dot(h, w_heads, preferred_element_type=jnp.float32)
                        + b_heads)

    return kernel


def pack_encoder_params(params, layer_sizes, latent_size, conditional,
                        conditional_size):
    """One-time packing of every parameter into a single (rows, 128) slab.

    Each band starts on an 8-row (sublane-tile) boundary.  Padded weight
    rows/cols, padded gamma/beta and padded head bias are all exactly 0.
    Returns (slab, layout) where layout holds static row offsets.
    """
    dx = layer_sizes[0]
    dc = conditional_size if conditional else 0

    bands = []
    layout = {"dx": dx, "dc": dc, "conditional": conditional,
              "latent": latent_size, "layers": []}
    row = [0]

    def add_band(arr2d):
        r, c = arr2d.shape
        assert c <= LANES
        rp = _pad_rows(r)
        band = jnp.zeros((rp, LANES), jnp.float32)
        band = band.at[:r, :c].set(arr2d.astype(jnp.float32))
        start = row[0]
        bands.append(band)
        row[0] += rp
        return start

    layers = params["layers"]
    for i, (w, _b, g, be) in enumerate(layers):   # hidden bias cancels under BN
        out_w = w.shape[1]
        if i == 0:
            if conditional:
                wx_start = add_band(w[:dx])
                wc_start = add_band(w[dx:])
            else:
                wx_start = add_band(w)
                wc_start = None
            w_start = (wx_start, wc_start)
        else:
            w_pad = jnp.zeros((LANES, out_w), jnp.float32).at[:w.shape[0], :].set(w)
            w_start = add_band(w_pad)
        gb = jnp.concatenate([g, be], axis=0)     # (2, out_w); pads stay 0
        gb_start = add_band(gb)
        layout["layers"].append({"w_start": w_start, "gb_start": gb_start,
                                 "out": out_w})

    last = layers[-1][0].shape[1]
    w_heads = jnp.concatenate([params["w_mean"], params["w_logvar"]], axis=1)
    w_heads_pad = jnp.zeros((LANES, w_heads.shape[1]), jnp.float32)
    w_heads_pad = w_heads_pad.at[:last, :].set(w_heads)
    layout["head_w_start"] = add_band(w_heads_pad)
    b_heads = jnp.concatenate([params["b_mean"], params["b_logvar"]], axis=1)
    layout["head_b_start"] = add_band(b_heads)

    slab = jnp.concatenate(bands, axis=0)
    layout["slab_rows"] = slab.shape[0]
    return slab, layout


def _cost_estimate(batch, layout):
    dx, dc = layout["dx"], layout["dc"]
    outs = [lyr["out"] for lyr in layout["layers"]]
    flops = 2 * batch * (dx + dc) * outs[0]
    prev = outs[0]
    for o in outs[1:]:
        flops += 2 * batch * prev * o
        prev = o
    flops += 2 * batch * prev * (2 * layout["latent"])
    transcendentals = sum(outs)                       # one rsqrt per BN feature
    bytes_accessed = 4 * (batch * (dx + dc)
                          + layout["slab_rows"] * LANES
                          + batch * LANES)
    return pl.CostEstimate(flops=flops, transcendentals=transcendentals,
                           bytes_accessed=bytes_accessed)


def encoder_forward(x, slab, layout, c=None):
    """Single grid-less Pallas call.

    Returns the fused lane-dense (batch, 128) output; columns [0:latent) are
    means, [latent:2*latent) are log_vars, the rest are zero padding.  Use
    split_heads() (or consume the fused slab directly downstream).
    """
    conditional = layout["conditional"]
    flat_inputs = [x, c, slab] if conditional else [x, slab]

    batch = x.shape[0]
    out_shape = jax.ShapeDtypeStruct((batch, LANES), jnp.float32)
    vmem_spec = pl.BlockSpec(memory_space=pltpu.MemorySpace.VMEM)

    return pl.pallas_call(
        make_encoder_kernel(layout),
        out_shape=out_shape,
        in_specs=[vmem_spec] * len(flat_inputs),
        out_specs=vmem_spec,
        cost_estimate=_cost_estimate(batch, layout),
    )(*flat_inputs)


def split_heads(fused, latent_size):
    """Convenience split for consumers that need (means, log_vars) separately."""
    return fused[:, :latent_size], fused[:, latent_size:2 * latent_size]


def init_encoder_params(key, layer_sizes, latent_size, conditional,
                        conditional_size):
    """Deterministic synthetic init matching the PyTorch module's shapes."""
    sizes = list(layer_sizes)
    if conditional:
        sizes[0] += conditional_size

    params = {"layers": []}
    for in_size, out_size in zip(sizes[:-1], sizes[1:]):
        key, kw, kb = jax.random.split(key, 3)
        scale = 1.0 / jnp.sqrt(jnp.float32(in_size))
        w = jax.random.uniform(kw, (in_size, out_size), jnp.float32, -scale, scale)
        b = jax.random.uniform(kb, (1, out_size), jnp.float32, -scale, scale)
        gamma = jnp.ones((1, out_size), jnp.float32)   # BN default init
        beta = jnp.zeros((1, out_size), jnp.float32)
        params["layers"].append((w, b, gamma, beta))

    last = sizes[-1]
    scale = 1.0 / jnp.sqrt(jnp.float32(last))
    key, k1, k2, k3, k4 = jax.random.split(key, 5)
    params["w_mean"] = jax.random.uniform(k1, (last, latent_size), jnp.float32, -scale, scale)
    params["b_mean"] = jax.random.uniform(k2, (1, latent_size), jnp.float32, -scale, scale)
    params["w_logvar"] = jax.random.uniform(k3, (last, latent_size), jnp.float32, -scale, scale)
    params["b_logvar"] = jax.random.uniform(k4, (1, latent_size), jnp.float32, -scale, scale)
    return params


def encoder_reference(x, params, c=None, conditional=True):
    """Pure-JAX reference mirroring the PyTorch forward (with hidden biases)."""
    if conditional:
        x = jnp.concatenate([x, c], axis=-1)
    h = x
    for (w, b, g, be) in params["layers"]:
        h = h @ w + b
        mu = jnp.mean(h, axis=0, keepdims=True)
        var = jnp.mean(jnp.square(h - mu), axis=0, keepdims=True)
        h = (h - mu) * jax.lax.rsqrt(var + BN_EPS) * g + be
        h = jnp.maximum(h, 0.0)
    means = h @ params["w_mean"] + params["b_mean"]
    log_vars = h @ params["w_logvar"] + params["b_logvar"]
    return means, log_vars


if __name__ == "__main__":
    # Small shapes consistent with the module:
    #   layer_sizes=[32, 64, 32], latent=16, conditional with conditional_size=8
    layer_sizes = [32, 64, 32]
    latent_size = 16
    conditional = True
    conditional_size = 8
    batch = 8

    key = jax.random.PRNGKey(0)
    key, kx, kc, kp = jax.random.split(key, 4)
    x = jax.random.normal(kx, (batch, layer_sizes[0]), jnp.float32)
    c = jax.random.normal(kc, (batch, conditional_size), jnp.float32)
    params = init_encoder_params(kp, layer_sizes, latent_size, conditional,
                                 conditional_size)

    slab, layout = pack_encoder_params(params, layer_sizes, latent_size,
                                       conditional, conditional_size)

    fused = encoder_forward(x, slab, layout, c=c)
    fused = jax.block_until_ready(fused)
    means, log_vars = split_heads(fused, latent_size)

    ref_means, ref_log_vars = encoder_reference(x, params, c=c,
                                                conditional=conditional)
    assert fused.shape == (batch, LANES)
    assert means.shape == (batch, latent_size)
    assert log_vars.shape == (batch, latent_size)
    assert jnp.allclose(means, ref_means, atol=1e-4, rtol=1e-4)
    assert jnp.allclose(log_vars, ref_log_vars, atol=1e-4, rtol=1e-4)
    # Padded output columns must be exact zeros (padded gamma/beta/bias = 0).
    assert jnp.all(fused[:, 2 * latent_size:] == 0.0)

    print("KERNEL_OK")
</pallas_src>

<mosaic_0001>
module attributes {stable_mosaic.version = 11 : i64} {
  func.func @kernel(%arg0: memref<8x32xf32, #tpu.memory_space<vmem>>, %arg1: memref<8x8xf32, #tpu.memory_space<vmem>>, %arg2: memref<320x128xf32, #tpu.memory_space<vmem>>, %arg3: memref<8x128xf32, #tpu.memory_space<vmem>>) attributes {dimension_semantics = [], scalar_prefetch = 0 : i64, scratch_operands = 0 : i64, tpu.core_type = #tpu.core_type<tc>} {
    %c0 = arith.constant 0 : index
    %c0_0 = arith.constant 0 : index
    %0 = vector.load %arg2[%c0, %c0_0] : memref<320x128xf32, #tpu.memory_space<vmem>>, vector<32x128xf32>
    %c0_1 = arith.constant 0 : index
    %c0_2 = arith.constant 0 : index
    %1 = vector.load %arg0[%c0_1, %c0_2] : memref<8x32xf32, #tpu.memory_space<vmem>>, vector<8x32xf32>
    %cst = arith.constant dense<0.000000e+00> : vector<8x128xf32>
    %2 = tpu.matmul %1, %0, %cst {dimension_numbers = #tpu.dot_dimension_numbers<[1], [0], [0], [1], [0, 0, 1, 1], [], []>} : vector<8x32xf32>, vector<32x128xf32>, vector<8x128xf32> -> vector<8x128xf32>
    %c32 = arith.constant 32 : index
    %c0_3 = arith.constant 0 : index
    %3 = vector.load %arg2[%c32, %c0_3] : memref<320x128xf32, #tpu.memory_space<vmem>>, vector<8x128xf32>
    %c0_4 = arith.constant 0 : index
    %c0_5 = arith.constant 0 : index
    %4 = vector.load %arg1[%c0_4, %c0_5] : memref<8x8xf32, #tpu.memory_space<vmem>>, vector<8x8xf32>
    %cst_6 = arith.constant dense<0.000000e+00> : vector<8x128xf32>
    %5 = tpu.matmul %4, %3, %cst_6 {dimension_numbers = #tpu.dot_dimension_numbers<[1], [0], [0], [1], [0, 0, 1, 1], [], []>} : vector<8x8xf32>, vector<8x128xf32>, vector<8x128xf32> -> vector<8x128xf32>
    %6 = arith.addf %2, %5 : vector<8x128xf32>
    %c40 = arith.constant 40 : index
    %c0_7 = arith.constant 0 : index
    %7 = vector.load %arg2[%c40, %c0_7] : memref<320x128xf32, #tpu.memory_space<vmem>>, vector<2x128xf32>
    %8 = vector.extract_strided_slice %7 {offsets = [0, 0], sizes = [1, 128], strides = [1, 1]} : vector<2x128xf32> to vector<1x128xf32>
    %9 = vector.extract_strided_slice %7 {offsets = [1, 0], sizes = [1, 128], strides = [1, 1]} : vector<2x128xf32> to vector<1x128xf32>
    %cst_8 = arith.constant dense<0.000000e+00> : vector<128xf32>
    %10 = vector.multi_reduction <add>, %6, %cst_8 [0] : vector<8x128xf32> to vector<128xf32>
    %11 = vector.shape_cast %10 : vector<128xf32> to vector<1x128xf32>
    %cst_9 = arith.constant 8.000000e+00 : f32
    %12 = vector.broadcast %cst_9 : f32 to vector<1x128xf32>
    %13 = arith.divf %11, %12 : vector<1x128xf32>
    %14 = vector.broadcast %13 : vector<1x128xf32> to vector<8x128xf32>
    %15 = arith.subf %6, %14 : vector<8x128xf32>
    %16 = arith.mulf %15, %15 : vector<8x128xf32>
    %cst_10 = arith.constant dense<0.000000e+00> : vector<128xf32>
    %17 = vector.multi_reduction <add>, %16, %cst_10 [0] : vector<8x128xf32> to vector<128xf32>
    %18 = vector.shape_cast %17 : vector<128xf32> to vector<1x128xf32>
    %cst_11 = arith.constant 8.000000e+00 : f32
    %19 = vector.broadcast %cst_11 : f32 to vector<1x128xf32>
    %20 = arith.divf %18, %19 : vector<1x128xf32>
    %cst_12 = arith.constant 9.99999974E-6 : f32
    %21 = vector.broadcast %cst_12 : f32 to vector<1x128xf32>
    %22 = arith.addf %20, %21 : vector<1x128xf32>
    %23 = math.rsqrt %22 : vector<1x128xf32>
    %24 = arith.mulf %8, %23 : vector<1x128xf32>
    %25 = arith.mulf %13, %24 : vector<1x128xf32>
    %26 = arith.subf %9, %25 : vector<1x128xf32>
    %27 = vector.broadcast %24 : vector<1x128xf32> to vector<8x128xf32>
    %28 = arith.mulf %6, %27 : vector<8x128xf32>
    %29 = vector.broadcast %26 : vector<1x128xf32> to vector<8x128xf32>
    %30 = arith.addf %28, %29 : vector<8x128xf32>
    %cst_13 = arith.constant 0.000000e+00 : f32
    %31 = vector.broadcast %cst_13 : f32 to vector<8x128xf32>
    %32 = arith.maximumf %30, %31 : vector<8x128xf32>
    %c48 = arith.constant 48 : index
    %c0_14 = arith.constant 0 : index
    %33 = vector.load %arg2[%c48, %c0_14] : memref<320x128xf32, #tpu.memory_space<vmem>>, vector<128x128xf32>
    %cst_15 = arith.constant dense<0.000000e+00> : vector<8x128xf32>
    %34 = tpu.matmul %32, %33, %cst_15 {dimension_numbers = #tpu.dot_dimension_numbers<[1], [0], [0], [1], [0, 0, 1, 1], [], []>} : vector<8x128xf32>, vector<128x128xf32>, vector<8x128xf32> -> vector<8x128xf32>
    %c176 = arith.constant 176 : index
    %c0_16 = arith.constant 0 : index
    %35 = vector.load %arg2[%c176, %c0_16] : memref<320x128xf32, #tpu.memory_space<vmem>>, vector<2x128xf32>
    %36 = vector.extract_strided_slice %35 {offsets = [0, 0], sizes = [1, 128], strides = [1, 1]} : vector<2x128xf32> to vector<1x128xf32>
    %37 = vector.extract_strided_slice %35 {offsets = [1, 0], sizes = [1, 128], strides = [1, 1]} : vector<2x128xf32> to vector<1x128xf32>
    %cst_17 = arith.constant dense<0.000000e+00> : vector<128xf32>
    %38 = vector.multi_reduction <add>, %34, %cst_17 [0] : vector<8x128xf32> to vector<128xf32>
    %39 = vector.shape_cast %38 : vector<128xf32> to vector<1x128xf32>
    %cst_18 = arith.constant 8.000000e+00 : f32
    %40 = vector.broadcast %cst_18 : f32 to vector<1x128xf32>
    %41 = arith.divf %39, %40 : vector<1x128xf32>
    %42 = vector.broadcast %41 : vector<1x128xf32> to vector<8x128xf32>
    %43 = arith.subf %34, %42 : vector<8x128xf32>
    %44 = arith.mulf %43, %43 : vector<8x128xf32>
    %cst_19 = arith.constant dense<0.000000e+00> : vector<128xf32>
    %45 = vector.multi_reduction <add>, %44, %cst_19 [0] : vector<8x128xf32> to vector<128xf32>
    %46 = vector.shape_cast %45 : vector<128xf32> to vector<1x128xf32>
    %cst_20 = arith.constant 8.000000e+00 : f32
    %47 = vector.broadcast %cst_20 : f32 to vector<1x128xf32>
    %48 = arith.divf %46, %47 : vector<1x128xf32>
    %cst_21 = arith.constant 9.99999974E-6 : f32
    %49 = vector.broadcast %cst_21 : f32 to vector<1x128xf32>
    %50 = arith.addf %48, %49 : vector<1x128xf32>
    %51 = math.rsqrt %50 : vector<1x128xf32>
    %52 = arith.mulf %36, %51 : vector<1x128xf32>
    %53 = arith.mulf %41, %52 : vector<1x128xf32>
    %54 = arith.subf %37, %53 : vector<1x128xf32>
    %55 = vector.broadcast %52 : vector<1x128xf32> to vector<8x128xf32>
    %56 = arith.mulf %34, %55 : vector<8x128xf32>
    %57 = vector.broadcast %54 : vector<1x128xf32> to vector<8x128xf32>
    %58 = arith.addf %56, %57 : vector<8x128xf32>
    %cst_22 = arith.constant 0.000000e+00 : f32
    %59 = vector.broadcast %cst_22 : f32 to vector<8x128xf32>
    %60 = arith.maximumf %58, %59 : vector<8x128xf32>
    %c184 = arith.constant 184 : index
    %c0_23 = arith.constant 0 : index
    %61 = vector.load %arg2[%c184, %c0_23] : memref<320x128xf32, #tpu.memory_space<vmem>>, vector<128x128xf32>
    %c312 = arith.constant 312 : index
    %c0_24 = arith.constant 0 : index
    %62 = vector.load %arg2[%c312, %c0_24] : memref<320x128xf32, #tpu.memory_space<vmem>>, vector<1x128xf32>
    %cst_25 = arith.constant dense<0.000000e+00> : vector<8x128xf32>
    %63 = tpu.matmul %60, %61, %cst_25 {dimension_numbers = #tpu.dot_dimension_numbers<[1], [0], [0], [1], [0, 0, 1, 1], [], []>} : vector<8x128xf32>, vector<128x128xf32>, vector<8x128xf32> -> vector<8x128xf32>
    %64 = vector.broadcast %62 : vector<1x128xf32> to vector<8x128xf32>
    %65 = arith.addf %63, %64 : vector<8x128xf32>
    %c0_26 = arith.constant 0 : index
    %c0_27 = arith.constant 0 : index
    %66 = vector.load %arg3[%c0_26, %c0_27] : memref<8x128xf32, #tpu.memory_space<vmem>>, vector<8x128xf32>
    tpu.vector_store %arg3[%c0_26, %c0_27], %65 {strides = array<i32>} : memref<8x128xf32, #tpu.memory_space<vmem>>, vector<8x128xf32>,
    return
  }
}

</mosaic_0001>

<bundles_post_ra>
// kernel: tpu_custom_call.1
= control target key start
LH: loop header
LB: loop body
LE: loop exit
PB: predicated region body
PF: predicated region fallthrough
CT: control target
= control target key end

     0   :  { %8 = vsyncpa [#allocation3], 0  ;;  %s799_s0 = inlined_call_operand.hbm [shape: f32[8,32], index: 0, kind: input, shape index: {}]   ;;  %s800_s1 = inlined_call_operand.hbm [shape: f32[8,8], index: 1, kind: input, shape index: {}]   ;;  %s801_s2 = inlined_call_operand.hbm [shape: f32[320,128], index: 2, kind: input, shape index: {}]   ;;  %s802_s3 = inlined_call_operand.hbm [shape: f32[8,128], index: 3, kind: output, shape index: {}]  }
   0x1   :  { %9 = vsyncpa [#allocation6], 0 }
   0x2   :  { %10 = vsyncpa [#allocation4], 0  ;;  %s702_s12 = smov [#allocation5]   ;;  %s703_s14 = smov [#allocation2]  }
   0x3   :  { %s27_s13 = sshll.u32 %s702_s12, 4  ;;  %s17_s15 = sshll.u32 %s703_s14, 4  ;;  %s28_s13 = int_to_ptr.vmem [resolvable:$true] %s27_s13  ;;  %s18_s15 = int_to_ptr.vmem [resolvable:$true] %s17_s15 }
   0x4   :  { %s624_s16 = scalar_lea.vmem %s28_s13, 128  ;;  %p629_p1 = scmp.lt.s32.totalorder %s28_s13, %s28_s13 }
   0x5   :  { %p625_p0 = scmp.ne.s32.totalorder %s28_s13, %s624_s16  ;;  %p630_p2 = scmp.lt.s32.totalorder %s624_s16, %s624_s16 }
   0x7   :  { %p631_p3 = por %p630_p2, %p629_p1 }
   0x9   :  { %p632_p4 = pnand %p631_p3, %p625_p0 }
   0xb   :  { %635 = shalt.err (!%p632_p4)
}
   0xc   :  { %30 = dma.hbm_to_vmem [thread:$0]  %s800_s1, 128, %s28_s13, [#allocation6]  }
   0xd   :  { %s644_s19 = scalar_lea.vmem %s18_s15, 128  ;;  %p649_p6 = scmp.lt.s32.totalorder %s18_s15, %s18_s15 }
   0xe   :  { %p645_p5 = scmp.ne.s32.totalorder %s18_s15, %s644_s19  ;;  %p650_p7 = scmp.lt.s32.totalorder %s644_s19, %s644_s19 }
  0x10   :  { %p651_p8 = por %p650_p7, %p649_p6 }
  0x12   :  { %p652_p9 = pnand %p651_p8, %p645_p5 }
  0x14   :  { %655 = shalt.err (!%p652_p9)
}
  0x15   :  { %20 = dma.hbm_to_vmem [thread:$0]  %s799_s0, 128, %s18_s15, [#allocation3]  }
  0x16   :  { %s704_s22 = smov [#allocation7]  }
  0x17   :  { %s36_s23 = sshll.u32 %s704_s22, 4  ;;  %s37_s23 = int_to_ptr.vmem [resolvable:$true] %s36_s23 }
  0x18   :  { %s664_s24 = scalar_lea.vmem %s37_s23, 5120  ;;  %p669_p11 = scmp.lt.s32.totalorder %s37_s23, %s37_s23 }
  0x19   :  { %p665_p10 = scmp.ne.s32.totalorder %s37_s23, %s664_s24  ;;  %p670_p12 = scmp.lt.s32.totalorder %s664_s24, %s664_s24 }
  0x1b   :  { %p671_p13 = por %p670_p12, %p669_p11 }
  0x1d   :  { %p672_p0 = pnand %p671_p13, %p665_p10 }
  0x1f   :  { %675 = shalt.err (!%p672_p0)
}
  0x20   :  { %s705_s1 = smov 128   ;;  %s706_s25 = smov 8  }
  0x21   :  { %42 = dma.hbm_to_vmem [thread:$0]  %s801_s2, 5120, %s37_s23, [#allocation6], %s705_s1, %s705_s1, %s706_s25  }
  0x22   :  { %696 = dma.done.wait [#allocation3], 128  }
  0x23   :  { %697 = vsyncadd [#allocation3], 4294967168 }
  0x24   :  { %698 = dma.done.wait [#allocation6], 5248  }
  0x25   :  { %699 = vsyncadd [#allocation6], 4294962048  ;;  %v707_v0 = vmov 0.0   ;;  %vm708_vm0 = vmmov 0   ;;  %vm59_vm1 = vcmask 64512   ;;  %v55_v1 = vld [vmem:[#allocation7 + $0x18] sm:$0xff]  ;;  %v233_v46 = vlaneseq }
  0x26   :  { %523 = vmatprep.subr.mxu1 %v707_v0  ;;  %518 = vmatprep.subr.mxu0 %v707_v0  ;;  %v54_v2 = vld [vmem:[#allocation7 + $0x10] sm:$0xff]  ;;  %v57_v3 = vld [vmem:[#allocation7 + $0x20] sm:$0xff]  ;;  %v58_v4 = vld [vmem:[#allocation5] sm:$0xff]  ;;  %vm133_vm2 = vcmask 261120   ;;  %s709_s0 = smov [#allocation8]  }
  0x27   :  { %520 = vmatprep.mubr.msk.f32.mxu0 %vm708_vm0, %v707_v0  ;;  %531 = vmatprep.mubr.msk.f32.mxu1 %vm708_vm0, %v707_v0  ;;  %v53_v5 = vld [vmem:[#allocation7 + $0x8] sm:$0xff]  ;;  %v52_v6 = vld [vmem:[#allocation7] sm:$0xff]  ;;  %v56_v7 = vld [vmem:[#allocation2] sm:$0xff]  ;;  %v769_v47 = vshrl.u32 %v233_v46, 7  ;;  %s464_s2 = sshll.u32 %s709_s0, 4  ;;  %s465_s2 = int_to_ptr.vmem [resolvable:$true] %s464_s2 }
  0x28   :  { %524 = vmatpush3.msra.mxu1 %v55_v1  ;;  %519 = vmatpush3.msra.mxu0 %v57_v3  ;;  %v259_v8 = vld [vmem:[#allocation7 + $0xa8] sm:$0xff]  ;;  %v258_v9 = vld [vmem:[#allocation7 + $0xa0] sm:$0xff]  ;;  %v257_v10 = vld [vmem:[#allocation7 + $0x98] sm:$0xff]  ;;  %s676_s28 = scalar_lea.vmem %s465_s2, 128  ;;  %p681_p2 = scmp.lt.s32.totalorder %s465_s2, %s465_s2 }
  0x29   :  { %525 = vmatprep.subr.mxu1 %v707_v0  ;;  %521 = vmatmul.mubr.msk.f32.vlgmr.msra.gmra.mxu0 %vm59_vm1, %v58_v4  ;;  %v256_v11 = vld [vmem:[#allocation7 + $0x90] sm:$0xff]  ;;  %v255_v12 = vld [vmem:[#allocation7 + $0x88] sm:$0xff]  ;;  %v254_v13 = vld [vmem:[#allocation7 + $0x80] sm:$0xff]  ;;  %v235_v51 = vsub.s32 0, %v769_v47  ;;  %v240_v55 = vsub.s32 1, %v769_v47  ;;  %p677_p1 = scmp.ne.s32.totalorder %s465_s2, %s676_s28  ;;  %p682_p3 = scmp.lt.s32.totalorder %s676_s28, %s676_s28 }
  0x2a   :  { %526 = vmatpush3.msra.mxu1 %v54_v2  ;;  %534 = vmatprep.subr.mxu0 %v707_v0  ;;  %v253_v14 = vld [vmem:[#allocation7 + $0x78] sm:$0xff]  ;;  %v252_v15 = vld [vmem:[#allocation7 + $0x70] sm:$0xff]  ;;  %v251_v16 = vld [vmem:[#allocation7 + $0x68] sm:$0xff] }
  0x2b   :  { %527 = vmatprep.subr.mxu1 %v707_v0  ;;  %566 = vmatprep.mubr.msk.f32.mxu0 %vm708_vm0, %v707_v0  ;;  %v250_v17 = vld [vmem:[#allocation7 + $0x60] sm:$0xff]  ;;  %v249_v18 = vld [vmem:[#allocation7 + $0x58] sm:$0xff]  ;;  %v248_v19 = vld [vmem:[#allocation7 + $0x50] sm:$0xff]  ;;  %p683_p4 = por %p682_p3, %p681_p2 }
  0x2c   :  { %528 = vmatpush3.msra.mxu1 %v53_v5  ;;  %535 = vmatpush3.msra.mxu0 %v259_v8  ;;  %v247_v20 = vld [vmem:[#allocation7 + $0x48] sm:$0xff]  ;;  %v246_v21 = vld [vmem:[#allocation7 + $0x40] sm:$0xff]  ;;  %v245_v22 = vld [vmem:[#allocation7 + $0x38] sm:$0xff] }
  0x2d   :  { %529 = vmatprep.subr.mxu1 %v707_v0  ;;  %536 = vmatprep.subr.mxu0 %v707_v0  ;;  %v244_v23 = vld [vmem:[#allocation7 + $0x30] sm:$0xff]  ;;  %v207_v48 = vld [vmem:[#allocation7 + $0x28] sm:$0x3]  ;;  %v379_v63 = vld [vmem:[#allocation7 + $0x120] sm:$0xff]  ;;  %p684_p5 = pnand %p683_p4, %p677_p1 }
  0x2e   :  { %530 = vmatpush3.msra.mxu1 %v52_v6  ;;  %537 = vmatpush3.msra.mxu0 %v258_v9  ;;  %v381_v61 = vld [vmem:[#allocation7 + $0x130] sm:$0xff]  ;;  %v380_v62 = vld [vmem:[#allocation7 + $0x128] sm:$0xff]  ;;  %v378_v1 = vld [vmem:[#allocation7 + $0x118] sm:$0xff] }
  0x2f   :  { %532 = vmatmul.mubr.msk.f32.vlgmr.msra.gmra.mxu1 %vm133_vm2, %v56_v7  ;;  %569 = vmatprep.subr.mxu1 %v707_v0  ;;  %v377_v2 = vld [vmem:[#allocation7 + $0x110] sm:$0xff]  ;;  %v376_v3 = vld [vmem:[#allocation7 + $0x108] sm:$0xff]  ;;  %v375_v4 = vld [vmem:[#allocation7 + $0x100] sm:$0xff] }
  0x30   :  { %601 = vmatprep.mubr.msk.f32.mxu1 %vm708_vm0, %v707_v0  ;;  %538 = vmatprep.subr.mxu0 %v707_v0  ;;  %v374_v5 = vld [vmem:[#allocation7 + $0xf8] sm:$0xff]  ;;  %v373_v6 = vld [vmem:[#allocation7 + $0xf0] sm:$0xff]  ;;  %v372_v7 = vld [vmem:[#allocation7 + $0xe8] sm:$0xff] }
  0x31   :  { %539 = vmatpush3.msra.mxu0 %v257_v10  ;;  %570 = vmatpush3.msra.mxu1 %v381_v61  ;;  %v371_v8 = vld [vmem:[#allocation7 + $0xe0] sm:$0xff]  ;;  %v370_v9 = vld [vmem:[#allocation7 + $0xd8] sm:$0xff]  ;;  %v369_v10 = vld [vmem:[#allocation7 + $0xd0] sm:$0xff] }
  0x32   :  { %540 = vmatprep.subr.mxu0 %v707_v0  ;;  %571 = vmatprep.subr.mxu1 %v707_v0 }
  0x33   :  { %541 = vmatpush3.msra.mxu0 %v256_v11  ;;  %572 = vmatpush3.msra.mxu1 %v380_v62  ;;  %v368_v11 = vld [vmem:[#allocation7 + $0xc8] sm:$0xff] }
  0x34   :  { %542 = vmatprep.subr.mxu0 %v707_v0  ;;  %573 = vmatprep.subr.mxu1 %v707_v0 }
  0x35   :  { %543 = vmatpush3.msra.mxu0 %v255_v12  ;;  %574 = vmatpush3.msra.mxu1 %v379_v63  ;;  %v367_v12 = vld [vmem:[#allocation7 + $0xc0] sm:$0xff] }
  0x36   :  { %544 = vmatprep.subr.mxu0 %v707_v0  ;;  %575 = vmatprep.subr.mxu1 %v707_v0 }
  0x37   :  { %545 = vmatpush3.msra.mxu0 %v254_v13  ;;  %576 = vmatpush3.msra.mxu1 %v378_v1  ;;  %v366_v13 = vld [vmem:[#allocation7 + $0xb8] sm:$0xff] }
  0x38   :  { %546 = vmatprep.subr.mxu0 %v707_v0  ;;  %577 = vmatprep.subr.mxu1 %v707_v0 }
  0x39   :  { %547 = vmatpush3.msra.mxu0 %v253_v14  ;;  %578 = vmatpush3.msra.mxu1 %v377_v2 }
  0x3a   :  { %548 = vmatprep.subr.mxu0 %v707_v0  ;;  %579 = vmatprep.subr.mxu1 %v707_v0 }
  0x3b   :  { %549 = vmatpush3.msra.mxu0 %v252_v15  ;;  %580 = vmatpush3.msra.mxu1 %v376_v3 }
  0x3c   :  { %550 = vmatprep.subr.mxu0 %v707_v0  ;;  %581 = vmatprep.subr.mxu1 %v707_v0 }
  0x3d   :  { %551 = vmatpush3.msra.mxu0 %v251_v16  ;;  %582 = vmatpush3.msra.mxu1 %v375_v4 }
  0x3e   :  { %552 = vmatprep.subr.mxu0 %v707_v0  ;;  %583 = vmatprep.subr.mxu1 %v707_v0 }
  0x3f   :  { %553 = vmatpush3.msra.mxu0 %v250_v17  ;;  %584 = vmatpush3.msra.mxu1 %v374_v5 }
  0x40   :  { %554 = vmatprep.subr.mxu0 %v707_v0  ;;  %585 = vmatprep.subr.mxu1 %v707_v0 }
  0x41   :  { %555 = vmatpush3.msra.mxu0 %v249_v18  ;;  %586 = vmatpush3.msra.mxu1 %v373_v6 }
  0x42   :  { %556 = vmatprep.subr.mxu0 %v707_v0  ;;  %587 = vmatprep.subr.mxu1 %v707_v0 }
  0x43   :  { %557 = vmatpush3.msra.mxu0 %v248_v19  ;;  %588 = vmatpush3.msra.mxu1 %v372_v7 }
  0x44   :  { %558 = vmatprep.subr.mxu0 %v707_v0  ;;  %589 = vmatprep.subr.mxu1 %v707_v0 }
  0x45   :  { %559 = vmatpush3.msra.mxu0 %v247_v20  ;;  %590 = vmatpush3.msra.mxu1 %v371_v8 }
  0x46   :  { %560 = vmatprep.subr.mxu0 %v707_v0  ;;  %591 = vmatprep.subr.mxu1 %v707_v0 }
  0x47   :  { %561 = vmatpush3.msra.mxu0 %v246_v21  ;;  %592 = vmatpush3.msra.mxu1 %v370_v9 }
  0x48   :  { %562 = vmatprep.subr.mxu0 %v707_v0  ;;  %593 = vmatprep.subr.mxu1 %v707_v0 }
  0x49   :  { %563 = vmatpush3.msra.mxu0 %v245_v22  ;;  %594 = vmatpush3.msra.mxu1 %v369_v10 }
  0x4a   :  { %564 = vmatprep.subr.mxu0 %v707_v0  ;;  %595 = vmatprep.subr.mxu1 %v707_v0 }
  0x4b   :  { %565 = vmatpush3.msra.mxu0 %v244_v23  ;;  %596 = vmatpush3.msra.mxu1 %v368_v11 }
  0x4c   :  { %597 = vmatprep.subr.mxu1 %v707_v0 }
  0x4d   :  { %598 = vmatpush3.msra.mxu1 %v367_v12 }
  0x4e   :  { %599 = vmatprep.subr.mxu1 %v707_v0 }
  0x4f   :  { %600 = vmatpush3.msra.mxu1 %v366_v13 }
  0xe9   :  { %v129_v24 = vpop.f32.mrf.mxu0 }
  0xeb   :  { %v522_v25 = vpop.f32.mrf.mxu0 }
  0xef   :  { %v203_v26 = vpop.f32.mrf.mxu1 }
  0xf0   :  { %v204_v27 = vadd.f32 %v203_v26, %v129_v24 }
  0xf1   :  { %v533_v28 = vpop.f32.mrf.mxu1 }
  0xf2   :  { %v208_v29 = vrot.slane %v204_v27, 4 }
  0xf4   :  { %v209_v30 = vadd.f32 %v208_v29, %v204_v27 }
  0xf6   :  { %v210_v31 = vrot.slane %v209_v30, 2 }
  0xf8   :  { %v211_v32 = vadd.f32 %v210_v31, %v209_v30 }
  0xfa   :  { %v212_v33 = vrot.slane %v211_v32, 1 }
  0xfc   :  { %v213_v34 = vadd.f32 %v212_v33, %v211_v32  ;;  %v330_v32 = vld [vmem:[#allocation7 + $0xb0] sm:$0x3] }
  0xfe   :  { %v215_v35 = vmul.f32 0.125, %v213_v34 }
 0x100   :  { %v216_v36 = vsub.f32 %v204_v27, %v215_v35 }
 0x102   :  { %v217_v37 = vmul.f32 %v216_v36, %v216_v36 }
 0x104   :  { %v218_v38 = vrot.slane %v217_v37, 4 }
 0x106   :  { %v219_v39 = vadd.f32 %v218_v38, %v217_v37 }
 0x108   :  { %v220_v40 = vrot.slane %v219_v39, 2 }
 0x10a   :  { %v221_v41 = vadd.f32 %v220_v40, %v219_v39 }
 0x10c   :  { %v222_v42 = vrot.slane %v221_v41, 1 }
 0x10e   :  { %v223_v43 = vadd.f32 %v222_v42, %v221_v41 }
 0x110   :  { %v224_v44 = vmul.f32 0.125, %v223_v43  ;;  %v476_v43 = vld [vmem:[#allocation7 + $0x138] ss:$0 sm:$0xff] }
 0x112   :  { %v225_v45 = vadd.f32 1e-05, %v224_v44 }
 0x114   :  { %612 = vrsqrt.f32 %v225_v45 }
 0x121   :  { %v613_v49 = vpop.eup %612 }
 0x122   :  { %v227_v50 = vmul.f32 %v613_v49, %v207_v48 }
 0x124   :  { %v228_v52 = vmul.f32 %v227_v50, %v215_v35  ;;  %v236_v54 = vrot.slane %v227_v50, %v235_v51 }
 0x126   :  { %v230_v53 = vrot.slane %v228_v52, 7  ;;  %v237_v57 = vmul.f32 %v236_v54, %v204_v27 }
 0x128   :  { %v232_v56 = vsub.f32 %v207_v48, %v230_v53 }
 0x12a   :  { %v241_v58 = vrot.slane %v232_v56, %v240_v55 }
 0x12c   :  { %v242_v59 = vadd.f32 %v241_v58, %v237_v57 }
 0x12e   :  { %v243_v60 = vmax.f32 %v242_v59, 0.0 }
 0x130   :  { %567 = vmatmul.mubr.f32.vlgmr.msra.gmra.mxu0 %v243_v60 }
 0x1f0   :  { %v326_v14 = vpop.f32.mrf.mxu0 }
 0x1f1   :  { %v331_v15 = vrot.slane %v326_v14, 4 }
 0x1f2   :  { %v568_v16 = vpop.f32.mrf.mxu0 }
 0x1f3   :  { %v332_v17 = vadd.f32 %v331_v15, %v326_v14 }
 0x1f5   :  { %v333_v18 = vrot.slane %v332_v17, 2 }
 0x1f7   :  { %v334_v19 = vadd.f32 %v333_v18, %v332_v17 }
 0x1f9   :  { %v335_v20 = vrot.slane %v334_v19, 1 }
 0x1fb   :  { %v336_v21 = vadd.f32 %v335_v20, %v334_v19 }
 0x1fd   :  { %v337_v22 = vmul.f32 0.125, %v336_v21 }
 0x1ff   :  { %v338_v23 = vsub.f32 %v326_v14, %v337_v22 }
 0x201   :  { %v339_v24 = vmul.f32 %v338_v23, %v338_v23 }
 0x203   :  { %v340_v25 = vrot.slane %v339_v24, 4 }
 0x205   :  { %v341_v26 = vadd.f32 %v340_v25, %v339_v24 }
 0x207   :  { %v342_v27 = vrot.slane %v341_v26, 2 }
 0x209   :  { %v343_v28 = vadd.f32 %v342_v27, %v341_v26 }
 0x20b   :  { %v344_v29 = vrot.slane %v343_v28, 1 }
 0x20d   :  { %v345_v30 = vadd.f32 %v344_v29, %v343_v28 }
 0x20f   :  { %v346_v31 = vmul.f32 0.125, %v345_v30 }
 0x211   :  { %v347_v0 = vadd.f32 1e-05, %v346_v31 }
 0x213   :  { %614 = vrsqrt.f32 %v347_v0 }
 0x220   :  { %v615_v33 = vpop.eup %614 }
 0x221   :  { %v349_v34 = vmul.f32 %v615_v33, %v330_v32 }
 0x223   :  { %v350_v35 = vmul.f32 %v349_v34, %v337_v22  ;;  %v358_v37 = vrot.slane %v349_v34, %v235_v51 }
 0x225   :  { %v352_v36 = vrot.slane %v350_v35, 7  ;;  %v359_v39 = vmul.f32 %v358_v37, %v326_v14 }
 0x227   :  { %v354_v38 = vsub.f32 %v330_v32, %v352_v36 }
 0x229   :  { %v363_v40 = vrot.slane %v354_v38, %v240_v55 }
 0x22b   :  { %v364_v41 = vadd.f32 %v363_v40, %v359_v39 }
 0x22d   :  { %v365_v42 = vmax.f32 %v364_v41, 0.0 }
 0x22f   :  { %602 = vmatmul.mubr.f32.vlgmr.msra.gmra.mxu1 %v365_v42 }
 0x2ef   :  { %v453_v44 = vpop.f32.mrf.mxu1 }
 0x2f0   :  { %v454_v45 = vadd.f32 %v476_v43, %v453_v44 }
 0x2f1   :  { %v603_v46 = vpop.f32.mrf.mxu1 }
 0x2f2   :  { %457 = vst [vmem:[#allocation8] sm:$0xff] %v454_v45 }
 0x2f3   :  { %687 = shalt.err (!%p684_p5)
}
 0x2f4   :  { %467 = dma.vmem_to_hbm [thread:$0]  %s465_s2, 128, %s802_s3, [#allocation4]  }
 0x2f5   :  { %700 = dma.done.wait [#allocation4], 128  }
 0x2f6   :  { %701 = vsyncadd [#allocation4], 4294967168 }
 0x2f7   :  { %471 = vsyncpa [#allocation3], 1 }
 0x2f8   :  { %472 = vsyncpa [#allocation6], 1 }
 0x2f9   :  { %473 = vsyncpa [#allocation4], 1 }

</bundles_post_ra>
